<compile_context>
chip_gen: v5e
topology: v5e:2x2
jax: 0.10.0
libtpu: 0.0.40
codegen_flags: <defaults>
</compile_context>

<pallas_src>
import jax
import jax.numpy as jnp
from jax.experimental import pallas as pl
from jax.experimental.pallas import tpu as pltpu

_LANE = 128
_MAX_TILE_LANES = 2048                      # sweet-spot cap for mem-bound kernels
_VMEM_WORKING_BUDGET = 24 * 1024 * 1024     # per-step working set target (fits v7x 64 MiB VMEM)
_VMEM_LIMIT_BYTES = 48 * 1024 * 1024        # raised scoped limit, headroom on v7x


def _stable_softmax_kernel(x_ref, o_ref):
    # Full reduction axis (dim 0) is resident in the block, so the column-wise
    # max / exp / sum / normalize is computed entirely in-kernel.
    x = x_ref[...].astype(jnp.float32)
    c = jnp.max(x, axis=0, keepdims=True)             # torch.max(x, dim=0).values
    x_exp = jnp.exp(x - c)
    total = jnp.sum(x_exp, axis=0, keepdims=True)     # sum(0, keepdim=True)
    # One reciprocal on a single (1, tc) row + broadcast multiply instead of
    # N per-element divides.  approx=False keeps the 1e-6 self-test tolerance.
    inv = pl.reciprocal(total, approx=False)
    o_ref[...] = (x_exp * inv).astype(o_ref.dtype)


def _stable_softmax_1d_kernel(x_ref, o_ref):
    # Lane-dense global softmax for 1-D inputs: the vector is laid out as
    # (R, 128), padded with -inf so pad lanes contribute exp(-inf) = 0.
    x = x_ref[...].astype(jnp.float32)
    c = jnp.max(x, axis=(0, 1), keepdims=True)
    x_exp = jnp.exp(x - c)
    total = jnp.sum(x_exp, axis=(0, 1), keepdims=True)
    inv = pl.reciprocal(total, approx=False)
    o_ref[...] = (x_exp * inv).astype(o_ref.dtype)


def _round_up(a, b):
    return ((a + b - 1) // b) * b


def _pick_tiling(n, d):
    """Return (tc, num_steps) with tc a multiple of 128 and num_steps*tc >= d."""
    n_lane_blocks = pl.cdiv(d, _LANE)
    # Largest tile (in 128-lane blocks) whose per-step working set fits budget:
    # ~2x in + 2x out double buffers + ~2 f32 temporaries ≈ 6 f32 copies.
    bytes_per_block = n * 4 * 6 * _LANE
    units_cap = max(1, _VMEM_WORKING_BUDGET // bytes_per_block)
    units_cap = min(units_cap, _MAX_TILE_LANES // _LANE, n_lane_blocks)
    units_cap = max(1, units_cap)

    num_steps = pl.cdiv(n_lane_blocks, units_cap)
    # Give both v7x TensorCores work on the "parallel" axis, but only when the
    # split keeps tiles >= 512 lanes (stays in the high-roofline regime for
    # the single-TC v5e/v6e case too).
    if num_steps == 1 and n_lane_blocks >= 8:
        num_steps = 2
    # Even split: minimizes padding (waste < num_steps blocks of 128 lanes).
    units = max(1, pl.cdiv(n_lane_blocks, num_steps))
    return units * _LANE, num_steps
    # TODO(synk): for very large N where a full (N, 128) f32 column block
    # exceeds VMEM, switch to a two-pass / online-softmax grid over N
    # (running max/sum scratch with pl.when init/finalize) instead of only
    # tiling the lane axis.


def _softmax_2d(x2):
    n, d = x2.shape
    tc, num_steps = _pick_tiling(n, d)

    # Pad D to num_steps*tc: lane-dense loads/stores (no masked vst), even
    # grid.  Padded columns are independent of the real ones and sliced away.
    d_pad = num_steps * tc
    if d_pad != d:
        x2 = jnp.pad(x2, ((0, 0), (0, d_pad - d)))

    out = pl.pallas_call(
        _stable_softmax_kernel,
        out_shape=jax.ShapeDtypeStruct((n, d_pad), x2.dtype),
        grid_spec=pltpu.PrefetchScalarGridSpec(
            num_scalar_prefetch=0,
            grid=(num_steps,),
            in_specs=[pl.BlockSpec((n, tc), lambda j: (0, j))],
            out_specs=pl.BlockSpec((n, tc), lambda j: (0, j)),
        ),
        compiler_params=pltpu.CompilerParams(
            dimension_semantics=("parallel",),
            vmem_limit_bytes=_VMEM_LIMIT_BYTES),
    )(x2)

    return out[:, :d] if d_pad != d else out


def _softmax_1d(x1):
    n = x1.shape[0]
    n_pad = _round_up(n, _LANE)
    xp = x1
    if n_pad != n:
        xp = jnp.pad(x1, (0, n_pad - n), constant_values=-jnp.inf)
    rows = n_pad // _LANE
    x2 = xp.reshape(rows, _LANE)
    # TODO(synk): for huge 1-D inputs where (rows, 128) exceeds VMEM, split the
    # global reduction into a gridded two-pass (max, then sum/normalize).

    out = pl.pallas_call(
        _stable_softmax_1d_kernel,
        out_shape=jax.ShapeDtypeStruct((rows, _LANE), x1.dtype),
        grid_spec=pltpu.PrefetchScalarGridSpec(
            num_scalar_prefetch=0,
            grid=(1,),
            in_specs=[pl.BlockSpec((rows, _LANE), lambda i: (0, 0))],
            out_specs=pl.BlockSpec((rows, _LANE), lambda i: (0, 0)),
        ),
        compiler_params=pltpu.CompilerParams(
            vmem_limit_bytes=_VMEM_LIMIT_BYTES),
    )(x2)

    return out.reshape(n_pad)[:n]


def stable_softmax(x):
    """Softmax over axis 0, numerically stabilized, matching StableSoftmax."""
    if x.ndim == 1:
        return _softmax_1d(x)
    orig_shape = x.shape
    x2 = x.reshape(x.shape[0], -1)
    out2 = _softmax_2d(x2)
    return out2.reshape(orig_shape)


def _ref_softmax(x):
    if x.ndim == 1:
        c = jnp.max(x)
    else:
        c = jnp.max(x, axis=0, keepdims=True)
    e = jnp.exp(x - c)
    return e / jnp.sum(e, axis=0, keepdims=True)


if __name__ == "__main__":
    key = jax.random.PRNGKey(0)
    k1, k2, k3, k4, k5 = jax.random.split(key, 5)

    # Small shape consistent with the forward pass: seq=8, hidden=32.
    x = jax.random.normal(k1, (8, 32), dtype=jnp.float32)
    out = jax.block_until_ready(stable_softmax(x))
    ref = _ref_softmax(x)
    assert out.shape == x.shape and out.dtype == x.dtype
    assert jnp.allclose(out, ref, atol=1e-6, rtol=1e-6)

    # D not a multiple of the tile: now runs as one 384-lane tile, no padding.
    xb = jax.random.normal(k2, (64, 384), dtype=jnp.float32)
    outb = jax.block_until_ready(stable_softmax(xb))
    assert jnp.allclose(outb, _ref_softmax(xb), atol=1e-6, rtol=1e-6)

    # Wide case: exercises the 2-step parallel split (two 512-lane tiles).
    xc = jax.random.normal(k3, (16, 1024), dtype=jnp.float32)
    outc = jax.block_until_ready(stable_softmax(xc))
    assert jnp.allclose(outc, _ref_softmax(xc), atol=1e-6, rtol=1e-6)

    # ND case: flattened to (8, 128) lane-dense.
    xd = jax.random.normal(k4, (8, 4, 32), dtype=jnp.float32)
    outd = jax.block_until_ready(stable_softmax(xd))
    assert outd.shape == xd.shape
    assert jnp.allclose(outd, _ref_softmax(xd), atol=1e-6, rtol=1e-6)

    # Lane-dense 1-D path with -inf padding.
    xv = jax.random.normal(k5, (200,), dtype=jnp.float32)
    outv = jax.block_until_ready(stable_softmax(xv))
    assert jnp.allclose(outv, _ref_softmax(xv), atol=1e-6, rtol=1e-6)

    print("KERNEL_OK")
</pallas_src>

<mosaic_0001>
module attributes {stable_mosaic.version = 11 : i64} {
  func.func @_stable_softmax_kernel(%arg0: i32, %arg1: memref<8x128xf32, #tpu.memory_space<vmem>>, %arg2: memref<8x128xf32, #tpu.memory_space<vmem>>) attributes {dimension_semantics = [#tpu.dimension_semantics<parallel>], iteration_bounds = array<i64: 1>, scalar_prefetch = 0 : i64, scratch_operands = 0 : i64, tpu.core_type = #tpu.core_type<tc>, window_params = [{transform_indices = @transform_0, window_bounds = array<i64: 8, 128>}, {transform_indices = @transform_1, window_bounds = array<i64: 8, 128>}]} {
    %c0 = arith.constant 0 : index
    %c0_0 = arith.constant 0 : index
    %0 = vector.load %arg1[%c0, %c0_0] : memref<8x128xf32, #tpu.memory_space<vmem>>, vector<8x128xf32>
    %cst = arith.constant dense<0xFF800000> : vector<128xf32>
    %1 = vector.multi_reduction <maximumf>, %0, %cst [0] : vector<8x128xf32> to vector<128xf32>
    %2 = vector.shape_cast %1 : vector<128xf32> to vector<1x128xf32>
    %3 = vector.broadcast %2 : vector<1x128xf32> to vector<8x128xf32>
    %4 = arith.subf %0, %3 : vector<8x128xf32>
    %5 = math.exp %4 : vector<8x128xf32>
    %cst_1 = arith.constant dense<0.000000e+00> : vector<128xf32>
    %6 = vector.multi_reduction <add>, %5, %cst_1 [0] : vector<8x128xf32> to vector<128xf32>
    %7 = vector.shape_cast %6 : vector<128xf32> to vector<1x128xf32>
    %8 = tpu.reciprocal %7 : vector<1x128xf32> -> vector<1x128xf32>
    %9 = vector.broadcast %8 : vector<1x128xf32> to vector<8x128xf32>
    %10 = arith.mulf %5, %9 : vector<8x128xf32>
    %c0_2 = arith.constant 0 : index
    %c0_3 = arith.constant 0 : index
    %11 = vector.load %arg2[%c0_2, %c0_3] : memref<8x128xf32, #tpu.memory_space<vmem>>, vector<8x128xf32>
    tpu.vector_store %arg2[%c0_2, %c0_3], %10 {strides = array<i32>} : memref<8x128xf32, #tpu.memory_space<vmem>>, vector<8x128xf32>,
    return
  }
  func.func @transform_0(%arg0: i32) -> (i32, i32) {
    %c0_i32 = arith.constant 0 : i32
    %c0_i32_0 = arith.constant 0 : i32
    return %c0_i32, %arg0 : i32, i32
  }
  func.func @transform_1(%arg0: i32) -> (i32, i32) {
    %c0_i32 = arith.constant 0 : i32
    %c0_i32_0 = arith.constant 0 : i32
    return %c0_i32, %arg0 : i32, i32
  }
}

</mosaic_0001>

<bundles_post_ra>
// kernel: tpu_custom_call.1
= control target key start
LH: loop header
LB: loop body
LE: loop exit
PB: predicated region body
PF: predicated region fallthrough
CT: control target
= control target key end

     0   :  { %6 = vsyncpa [#allocation3], 0  ;;  %s148_s0 = inlined_call_operand.hbm [shape: f32[8,128], index: 0, kind: input, shape index: {}]   ;;  %s149_s1 = inlined_call_operand.hbm [shape: f32[8,128], index: 1, kind: output, shape index: {}]  }
   0x1   :  { %7 = vsyncpa [#allocation4], 0  ;;  %s13_s8 = sshll.u32 %s148_s0, 4  ;;  %s130_s9 = smov [#allocation2]   ;;  %s14_s8 = int_to_ptr.hbm [resolvable:$true] %s13_s8 }
   0x2   :  { %s15_s10 = sshll.u32 %s130_s9, 4  ;;  %s16_s10 = int_to_ptr.vmem [resolvable:$true] %s15_s10 }
   0x3   :  { %18 = dma.hbm_to_vmem [thread:$0]  %s14_s8, 128, %s16_s10, [#allocation3]  }
   0x4   :  { %126 = dma.done.wait [#allocation3], 128  }
   0x5   :  { %127 = vsyncadd [#allocation3], 4294967168  ;;  %v23_v0 = vld [vmem:[#allocation2] sm:$0xff]  ;;  %s131_s0 = smov [#allocation5]   ;;  %s62_s14 = sshll.u32 %s149_s1, 4  ;;  %s63_s14 = int_to_ptr.hbm [resolvable:$true] %s62_s14 }
   0x6   :  { %v24_v1 = vrot.slane %v23_v0, 4  ;;  %s60_s11 = sshll.u32 %s131_s0, 4  ;;  %s61_s11 = int_to_ptr.vmem [resolvable:$true] %s60_s11 }
   0x8   :  { %v25_v2 = vmax.f32 %v23_v0, %v24_v1 }
   0xa   :  { %v26_v3 = vrot.slane %v25_v2, 2 }
   0xc   :  { %v27_v4 = vmax.f32 %v25_v2, %v26_v3 }
   0xe   :  { %v28_v5 = vrot.slane %v27_v4, 1 }
  0x10   :  { %v29_v6 = vmax.f32 %v27_v4, %v28_v5 }
  0x12   :  { %v30_v7 = vsub.f32 %v23_v0, %v29_v6 }
  0x14   :  { %v31_v8 = vmul.f32 1.442695, %v30_v7 }
  0x16   :  { %74 = vpow2.f32 %v31_v8 }
  0x1c   :  { %v75_v9 = vpop.eup %74 }
  0x1d   :  { %v33_v10 = vrot.slane %v75_v9, 4 }
  0x1f   :  { %v34_v11 = vadd.f32 %v75_v9, %v33_v10 }
  0x21   :  { %v35_v12 = vrot.slane %v34_v11, 2 }
  0x23   :  { %v36_v13 = vadd.f32 %v35_v12, %v34_v11 }
  0x25   :  { %v37_v14 = vrot.slane %v36_v13, 1 }
  0x27   :  { %v38_v15 = vadd.f32 %v37_v14, %v36_v13 }
  0x29   :  { %76 = vrcp.f32 %v38_v15  ;;  %v50_v18 = vand.u32 2147483648, %v38_v15  ;;  %vm44_vm0 = vweird.f32 %v38_v15  ;;  %v48_v20 = vand.u32 2147483647, %v38_v15 }
  0x2b   :  { %v51_v22 = vor.u32 1.1754944e-38, %v50_v18  ;;  %vm49_vm3 = vcmp.eq.f32.partialorder %v48_v20, 8.507059e+37 }
  0x2f   :  { %v77_v16 = vpop.eup %76 }
  0x30   :  { %v40_v17 = vmul.f32 %v77_v16, %v38_v15  ;;  %vm45_vm1 = vweird.f32 %v77_v16 }
  0x31   :  { %vm46_vm2 = vmor %vm44_vm0, %vm45_vm1 }
  0x32   :  { %v41_v19 = vsub.f32 1.0, %v40_v17 }
  0x34   :  { %v42_v21 = vmul.f32 %v77_v16, %v41_v19 }
  0x36   :  { %v43_v23 = vadd.f32 %v77_v16, %v42_v21 }
  0x38   :  { %v47_v24 = vsel %vm46_vm2, %v77_v16, %v43_v23 }
  0x39   :  { %v52_v25 = vsel %vm49_vm3, %v51_v22, %v47_v24 }
  0x3a   :  { %v53_v26 = vmul.f32 %v75_v9, %v52_v25 }
  0x3c   :  { %54 = vst [vmem:[#allocation5] sm:$0xff] %v53_v26 }
  0x3d   :  { %65 = dma.vmem_to_hbm [thread:$0]  %s61_s11, 128, %s63_s14, [#allocation4]  }
  0x3e   :  { %128 = dma.done.wait [#allocation4], 128  }
  0x3f   :  { %129 = vsyncadd [#allocation4], 4294967168 }
  0x40   :  { %70 = vsyncpa [#allocation3], 1 }
  0x41   :  { %71 = vsyncpa [#allocation4], 1 }

</bundles_post_ra>
